<compile_context>
chip_gen: v7x
topology: tpu7x:2x2x1
jax: 0.10.0
libtpu: 0.0.40
codegen_flags: <defaults>
</compile_context>

<pallas_src>
import functools

import jax
import jax.numpy as jnp
from jax import lax
from jax.experimental import pallas as pl
from jax.experimental.pallas import tpu as pltpu


def _encoder_gru_kernel(pm_ref, w_ref, wib_ref, b0_ref, b1_ref, H_ref, hn_sc,
                        *, unroll):
    """One grid step = t_blk GRU timesteps for (one batch element, one city tile)."""
    tb = pl.program_id(2)            # time-chunk index (sequential, 'arbitrary')
    t_blk = pm_ref.shape[1]
    Hd = hn_sc.shape[1]

    # h0 = 0 at the first time chunk of every (batch, city-tile).
    @pl.when(tb == 0)
    def _():
        hn_sc[...] = jnp.zeros_like(hn_sc)

    # Resident parameters, loaded once per grid step (hoisted out of the loop).
    w_all = w_ref[...]    # (Hd, 4*Hd)  [r | z | n_hid(inside r*) | n_fc(outside r*)]
    wib = wib_ref[...]    # (1, 4*Hd)   pm25 input columns (zeros in the n_hid block)
    b1 = b1_ref[...]      # (1, 4*Hd)   biases for global t > 0 (xn carries fc_b)

    def gru_step(hn, pm, b):
        # One fused MXU matmul for all four gate column blocks.
        g = jnp.dot(hn, w_all, preferred_element_type=jnp.float32)   # (rows, 4*Hd)
        pre = g + pm * wib + b                                       # lane-dense
        r = jax.nn.sigmoid(pre[:, 0 * Hd:1 * Hd])
        z = jax.nn.sigmoid(pre[:, 1 * Hd:2 * Hd])
        n = jnp.tanh(pre[:, 3 * Hd:4 * Hd] + r * pre[:, 2 * Hd:3 * Hd])
        return (1.0 - z) * n + z * hn

    # Peel the chunk's first timestep: the un-augmented bias is only needed at
    # global t == 0 (xn = 0 rather than fc(h_{-1})), so select once per chunk
    # instead of once per unrolled iteration.
    b_first = jnp.where(tb == 0, b0_ref[...], b1)
    hn = gru_step(hn_sc[...], pm_ref[0, 0], b_first)
    H_ref[0, 0] = hn

    def step(i, hn):
        hn = gru_step(hn, pm_ref[0, i], b1)
        H_ref[0, i] = hn
        return hn

    hn_sc[...] = lax.fori_loop(1, t_blk, step, hn, unroll=unroll)


def _round_up(x, m):
    return -(-x // m) * m


def _vmem_capacity_bytes():
    try:
        cap = getattr(pltpu.get_tpu_info(), "vmem_capacity_bytes", None)
        if cap:
            return int(cap)
    except Exception:
        pass
    return 64 * 2**20          # conservative: v7x per-TensorCore physical VMEM


def _pick_tiles(B, C, T, Hd, vmem_cap):
    """VMEM/generation-aware tile sizes; pads C / T instead of degenerate fallbacks."""
    row_cap = 512 if vmem_cap >= 96 * 2**20 else 256     # v5e/v6e (128 MiB) vs v7x (64 MiB)
    if B == 1 and C >= 16:
        # Guarantee >= 2 parallel blocks so v7x's second TensorCore gets work.
        c_tile = min(row_cap, _round_up((C + 1) // 2, 8))
    elif C <= row_cap:
        c_tile = C                                       # block == full dim (always legal)
    else:
        c_tile = row_cap                                 # multiple of 8
    C_pad = _round_up(C, c_tile)

    t_blk = min(T, 32 if vmem_cap >= 96 * 2**20 else 16)

    def vmem_estimate(tb):
        blocks = 2 * 4 * tb * c_tile * (Hd + 1)          # pm in + H out, double-buffered
        weights = 2 * 4 * (4 * Hd * Hd + 3 * 4 * Hd)     # w_all + wib/b0/b1, double-buffered
        scratch = 4 * c_tile * Hd                        # hidden-state carry
        return blocks + weights + scratch

    budget = int(0.45 * vmem_cap)
    while t_blk > 1 and vmem_estimate(t_blk) > budget:
        t_blk = max(1, t_blk // 2)
    T_pad = _round_up(T, t_blk)
    return c_tile, C_pad, t_blk, T_pad, vmem_estimate(t_blk)


def encoder_forward(pm25_hist, params, hid_dim):
    """pm25_hist: (B, T, C, 1) float32. Returns H (B, T, C, hid), xn (B, C, 1)."""
    B, T, C, in_dim = pm25_hist.shape
    assert in_dim == 1, "module semantics force in_dim == 1"
    Hd = hid_dim
    f32 = jnp.float32

    w_ih, w_hh, b_ih, b_hh, fc_w, fc_b = params

    # Per-gate parameter layout (PyTorch gate order r, z, n).
    wia = w_ih[:, 0].astype(f32).reshape(3, Hd)     # xn input column per gate
    wib = w_ih[:, 1].astype(f32).reshape(3, Hd)     # pm25 input column per gate
    whh = w_hh.astype(f32).reshape(3, Hd, Hd).transpose(0, 2, 1)   # right-multiply form
    bih = b_ih.astype(f32).reshape(3, Hd)
    bhh = b_hh.astype(f32).reshape(3, Hd)
    fcw = fc_w.astype(f32).reshape(Hd)
    fcb = fc_b.astype(f32).reshape(())

    # Fold fc into the hidden matmul:  xn_t * Wx = h_{t-1} @ (fcw^T ⊗ Wx) + fc_b*Wx.
    fc_outer = fcw[None, :, None] * wia[:, None, :]          # (3, Hd, Hd)

    # Fused gate matrix (Hd, 4*Hd): [r | z | n_hid(inside r*) | n_fc(outside r*)].
    w_all = jnp.concatenate([whh[0] + fc_outer[0],
                             whh[1] + fc_outer[1],
                             whh[2],
                             fc_outer[2]], axis=1)

    zeros_h = jnp.zeros((Hd,), f32)
    wib_all = jnp.concatenate([wib[0], wib[1], zeros_h, wib[2]]).reshape(1, 4 * Hd)
    # Global t == 0 bias (xn = 0) vs t > 0 bias (xn carries fc_b).  bhh_n sits in
    # the n_hid block so it stays inside the r* product.
    b0_all = jnp.concatenate([bih[0] + bhh[0],
                              bih[1] + bhh[1],
                              bhh[2],
                              bih[2]]).reshape(1, 4 * Hd)
    b1_all = b0_all + fcb * jnp.concatenate(
        [wia[0], wia[1], zeros_h, wia[2]]).reshape(1, 4 * Hd)

    vmem_cap = _vmem_capacity_bytes()
    c_tile, C_pad, t_blk, T_pad, est = _pick_tiles(B, C, T, Hd, vmem_cap)
    vmem_limit = int(min(0.75 * vmem_cap, max(32 * 2**20, 2 * est)))

    # pm25 is consumed in its native (B, T, C, 1) layout — no wrapper transpose.
    pm = pm25_hist.astype(f32)
    if C_pad != C or T_pad != T:
        pm = jnp.pad(pm, ((0, 0), (0, T_pad - T), (0, C_pad - C), (0, 0)))

    # Fully unroll the serial time loop only while the live (c_tile, Hd)
    # intermediates fit in a handful of vregs; otherwise unroll 4x.
    unroll = True if c_tile * Hd <= 4096 else min(4, max(t_blk - 1, 1))

    grid = (B, C_pad // c_tile, T_pad // t_blk)

    H_pad = pl.pallas_call(
        functools.partial(_encoder_gru_kernel, unroll=unroll),
        out_shape=jax.ShapeDtypeStruct((B, T_pad, C_pad, Hd), f32),
        grid_spec=pltpu.PrefetchScalarGridSpec(
            num_scalar_prefetch=0,
            grid=grid,
            in_specs=[
                pl.BlockSpec((1, t_blk, c_tile, 1), lambda b, ci, tb: (b, tb, ci, 0)),
                pl.BlockSpec((Hd, 4 * Hd), lambda b, ci, tb: (0, 0)),
                pl.BlockSpec((1, 4 * Hd), lambda b, ci, tb: (0, 0)),
                pl.BlockSpec((1, 4 * Hd), lambda b, ci, tb: (0, 0)),
                pl.BlockSpec((1, 4 * Hd), lambda b, ci, tb: (0, 0)),
            ],
            # H written directly in (B, T, C, Hd) — no post-kernel transpose round-trip.
            out_specs=pl.BlockSpec((1, t_blk, c_tile, Hd),
                                   lambda b, ci, tb: (b, tb, ci, 0)),
            scratch_shapes=[pltpu.VMEM((c_tile, Hd), f32)],
        ),
        compiler_params=pltpu.CompilerParams(
            dimension_semantics=("parallel", "parallel", "arbitrary"),
            vmem_limit_bytes=vmem_limit),
    )(pm, w_all, wib_all, b0_all, b1_all)

    H = H_pad[:, :T, :C] if (C_pad != C or T_pad != T) else H_pad
    xn = H[:, -1] @ fc_w.astype(f32).T + fc_b.astype(f32)    # fc(h_T): (B, C, 1)
    return H, xn


def encoder_reference(pm25_hist, w_ih, w_hh, b_ih, b_hh, fc_w, fc_b, hid_dim):
    """Pure-JAX reference mirroring the PyTorch forward loop."""
    B, T, C, in_dim = pm25_hist.shape
    N = B * C
    Hd = hid_dim
    hn = jnp.zeros((N, Hd), jnp.float32)
    xn = jnp.zeros((B, C, 1), jnp.float32)
    Hs = []
    for i in range(T):
        x = jnp.concatenate([xn, pm25_hist[:, i]], axis=-1).reshape(N, 2 * in_dim)
        gx = x @ w_ih.T + b_ih
        gh = hn @ w_hh.T + b_hh
        r = jax.nn.sigmoid(gx[:, :Hd] + gh[:, :Hd])
        z = jax.nn.sigmoid(gx[:, Hd:2 * Hd] + gh[:, Hd:2 * Hd])
        n = jnp.tanh(gx[:, 2 * Hd:] + r * gh[:, 2 * Hd:])
        hn = (1.0 - z) * n + z * hn
        Hs.append(hn.reshape(B, C, Hd))
        xn = hn.reshape(B, C, Hd) @ fc_w.T + fc_b
    return jnp.stack(Hs, axis=1), xn


if __name__ == "__main__":
    # Small shapes consistent with the module: in_dim=1, hid_dim=32.
    B, C, T, Hd, in_dim = 2, 8, 8, 32, 1

    key = jax.random.PRNGKey(0)
    k = jax.random.split(key, 7)
    stdv = 1.0 / float(jnp.sqrt(Hd))
    # PyTorch GRUCell / Linear parameter shapes, deterministic init.
    w_ih = jax.random.uniform(k[0], (3 * Hd, 2 * in_dim), jnp.float32, -stdv, stdv)
    w_hh = jax.random.uniform(k[1], (3 * Hd, Hd), jnp.float32, -stdv, stdv)
    b_ih = jax.random.uniform(k[2], (3 * Hd,), jnp.float32, -stdv, stdv)
    b_hh = jax.random.uniform(k[3], (3 * Hd,), jnp.float32, -stdv, stdv)
    fc_w = jax.random.uniform(k[4], (1, Hd), jnp.float32, -stdv, stdv)
    fc_b = jax.random.uniform(k[5], (1,), jnp.float32, -stdv, stdv)
    pm25_hist = jax.random.normal(k[6], (B, T, C, in_dim), jnp.float32)

    params = (w_ih, w_hh, b_ih, b_hh, fc_w, fc_b)

    H, xn = encoder_forward(pm25_hist, params, Hd)
    jax.block_until_ready((H, xn))

    H_ref, xn_ref = encoder_reference(pm25_hist, *params, Hd)

    assert H.shape == (B, T, C, Hd), H.shape
    assert xn.shape == (B, C, 1), xn.shape
    assert jnp.allclose(H, H_ref, atol=1e-4, rtol=1e-4)
    assert jnp.allclose(xn, xn_ref, atol=1e-4, rtol=1e-4)
    print("KERNEL_OK")
</pallas_src>

<mosaic_0001>
module attributes {stable_mosaic.version = 11 : i64} {
  func.func @_encoder_gru_kernel(%arg0: i32, %arg1: i32, %arg2: i32, %arg3: memref<1x8x8x1xf32, #tpu.memory_space<vmem>>, %arg4: memref<32x128xf32, #tpu.memory_space<vmem>>, %arg5: memref<1x128xf32, #tpu.memory_space<vmem>>, %arg6: memref<1x128xf32, #tpu.memory_space<vmem>>, %arg7: memref<1x128xf32, #tpu.memory_space<vmem>>, %arg8: memref<1x8x8x32xf32, #tpu.memory_space<vmem>>, %arg9: memref<8x32xf32, #tpu.memory_space<vmem>>) attributes {dimension_semantics = [#tpu.dimension_semantics<parallel>, #tpu.dimension_semantics<parallel>, #tpu.dimension_semantics<arbitrary>], iteration_bounds = array<i64: 2, 1, 1>, scalar_prefetch = 0 : i64, scratch_operands = 1 : i64, tpu.core_type = #tpu.core_type<tc>, window_params = [{transform_indices = @transform_0, window_bounds = array<i64: 1, 8, 8, 1>}, {pipeline_mode = #tpu.pipeline_mode<synchronous>, transform_indices = @transform_1, window_bounds = array<i64: 32, 128>}, {pipeline_mode = #tpu.pipeline_mode<synchronous>, transform_indices = @transform_2, window_bounds = array<i64: 1, 128>}, {pipeline_mode = #tpu.pipeline_mode<synchronous>, transform_indices = @transform_3, window_bounds = array<i64: 1, 128>}, {pipeline_mode = #tpu.pipeline_mode<synchronous>, transform_indices = @transform_4, window_bounds = array<i64: 1, 128>}, {transform_indices = @transform_5, window_bounds = array<i64: 1, 8, 8, 32>}]} {
    %c0_i32 = arith.constant 0 : i32
    %0 = arith.cmpi eq, %arg2, %c0_i32 : i32
    %1 = arith.extui %0 : i1 to i32
    %c0_i32_0 = arith.constant 0 : i32
    %2 = arith.cmpi ne, %1, %c0_i32_0 : i32
    scf.if %2 {
      %cst_95 = arith.constant 0.000000e+00 : f32
      %297 = vector.broadcast %cst_95 : f32 to vector<8x32xf32>
      %c0_96 = arith.constant 0 : index
      %c0_97 = arith.constant 0 : index
      %298 = vector.load %arg9[%c0_96, %c0_97] : memref<8x32xf32, #tpu.memory_space<vmem>>, vector<8x32xf32>
      tpu.vector_store %arg9[%c0_96, %c0_97], %297 {strides = array<i32>} : memref<8x32xf32, #tpu.memory_space<vmem>>, vector<8x32xf32>,
    } else {
    }
    %c0 = arith.constant 0 : index
    %c0_1 = arith.constant 0 : index
    %3 = vector.load %arg4[%c0, %c0_1] : memref<32x128xf32, #tpu.memory_space<vmem>>, vector<32x128xf32>
    %c0_2 = arith.constant 0 : index
    %c0_3 = arith.constant 0 : index
    %4 = vector.load %arg5[%c0_2, %c0_3] : memref<1x128xf32, #tpu.memory_space<vmem>>, vector<1x128xf32>
    %c0_4 = arith.constant 0 : index
    %c0_5 = arith.constant 0 : index
    %5 = vector.load %arg7[%c0_4, %c0_5] : memref<1x128xf32, #tpu.memory_space<vmem>>, vector<1x128xf32>
    %c0_i32_6 = arith.constant 0 : i32
    %6 = arith.cmpi eq, %arg2, %c0_i32_6 : i32
    %c0_7 = arith.constant 0 : index
    %c0_8 = arith.constant 0 : index
    %7 = vector.load %arg6[%c0_7, %c0_8] : memref<1x128xf32, #tpu.memory_space<vmem>>, vector<1x128xf32>
    %8 = arith.select %6, %7, %5 : vector<1x128xf32>
    %c0_9 = arith.constant 0 : index
    %c0_10 = arith.constant 0 : index
    %9 = vector.load %arg9[%c0_9, %c0_10] : memref<8x32xf32, #tpu.memory_space<vmem>>, vector<8x32xf32>
    %c0_11 = arith.constant 0 : index
    %c0_12 = arith.constant 0 : index
    %c0_13 = arith.constant 0 : index
    %c0_14 = arith.constant 0 : index
    %10 = vector.load %arg3[%c0_11, %c0_12, %c0_13, %c0_14] : memref<1x8x8x1xf32, #tpu.memory_space<vmem>>, vector<1x1x8x1xf32>
    %11 = vector.shape_cast %10 : vector<1x1x8x1xf32> to vector<8x1xf32>
    %cst = arith.constant dense<0.000000e+00> : vector<8x128xf32>
    %12 = tpu.matmul %9, %3, %cst {dimension_numbers = #tpu.dot_dimension_numbers<[1], [0], [0], [1], [0, 0, 1, 1], [], []>} : vector<8x32xf32>, vector<32x128xf32>, vector<8x128xf32> -> vector<8x128xf32>
    %13 = vector.broadcast %11 : vector<8x1xf32> to vector<8x128xf32>
    %14 = vector.broadcast %4 : vector<1x128xf32> to vector<8x128xf32>
    %15 = arith.mulf %13, %14 : vector<8x128xf32>
    %16 = arith.addf %12, %15 : vector<8x128xf32>
    %17 = vector.broadcast %8 : vector<1x128xf32> to vector<8x128xf32>
    %18 = arith.addf %16, %17 : vector<8x128xf32>
    %19 = vector.extract_strided_slice %18 {offsets = [0, 0], sizes = [8, 32], strides = [1, 1]} : vector<8x128xf32> to vector<8x32xf32>
    %20 = arith.negf %19 : vector<8x32xf32>
    %21 = math.exp %20 : vector<8x32xf32>
    %cst_15 = arith.constant 1.000000e+00 : f32
    %22 = vector.broadcast %cst_15 : f32 to vector<8x32xf32>
    %23 = arith.addf %22, %21 : vector<8x32xf32>
    %24 = arith.divf %22, %23 : vector<8x32xf32>
    %25 = vector.extract_strided_slice %18 {offsets = [0, 32], sizes = [8, 32], strides = [1, 1]} : vector<8x128xf32> to vector<8x32xf32>
    %26 = arith.negf %25 : vector<8x32xf32>
    %27 = math.exp %26 : vector<8x32xf32>
    %cst_16 = arith.constant 1.000000e+00 : f32
    %28 = vector.broadcast %cst_16 : f32 to vector<8x32xf32>
    %29 = arith.addf %28, %27 : vector<8x32xf32>
    %30 = arith.divf %28, %29 : vector<8x32xf32>
    %31 = vector.extract_strided_slice %18 {offsets = [0, 96], sizes = [8, 32], strides = [1, 1]} : vector<8x128xf32> to vector<8x32xf32>
    %32 = vector.extract_strided_slice %18 {offsets = [0, 64], sizes = [8, 32], strides = [1, 1]} : vector<8x128xf32> to vector<8x32xf32>
    %33 = arith.mulf %24, %32 : vector<8x32xf32>
    %34 = arith.addf %31, %33 : vector<8x32xf32>
    %35 = math.tanh %34 : vector<8x32xf32>
    %cst_17 = arith.constant 1.000000e+00 : f32
    %36 = vector.broadcast %cst_17 : f32 to vector<8x32xf32>
    %37 = arith.subf %36, %30 : vector<8x32xf32>
    %38 = arith.mulf %37, %35 : vector<8x32xf32>
    %39 = arith.mulf %30, %9 : vector<8x32xf32>
    %40 = arith.addf %38, %39 : vector<8x32xf32>
    %c0_18 = arith.constant 0 : index
    %c0_19 = arith.constant 0 : index
    %c0_20 = arith.constant 0 : index
    %c0_21 = arith.constant 0 : index
    %41 = vector.load %arg8[%c0_18, %c0_19, %c0_20, %c0_21] : memref<1x8x8x32xf32, #tpu.memory_space<vmem>>, vector<1x1x8x32xf32>
    %42 = vector.shape_cast %41 : vector<1x1x8x32xf32> to vector<8x32xf32>
    %43 = vector.shape_cast %40 : vector<8x32xf32> to vector<1x1x8x32xf32>
    tpu.vector_store %arg8[%c0_18, %c0_19, %c0_20, %c0_21], %43 {strides = array<i32>} : memref<1x8x8x32xf32, #tpu.memory_space<vmem>>, vector<1x1x8x32xf32>,
    %c1_i32 = arith.constant 1 : i32
    %c0_22 = arith.constant 0 : index
    %44 = arith.index_cast %c1_i32 : i32 to index
    %c0_23 = arith.constant 0 : index
    %c0_24 = arith.constant 0 : index
    %45 = vector.load %arg3[%c0_22, %44, %c0_23, %c0_24] : memref<1x8x8x1xf32, #tpu.memory_space<vmem>>, vector<1x1x8x1xf32>
    %46 = vector.shape_cast %45 : vector<1x1x8x1xf32> to vector<8x1xf32>
    %cst_25 = arith.constant dense<0.000000e+00> : vector<8x128xf32>
    %47 = tpu.matmul %40, %3, %cst_25 {dimension_numbers = #tpu.dot_dimension_numbers<[1], [0], [0], [1], [0, 0, 1, 1], [], []>} : vector<8x32xf32>, vector<32x128xf32>, vector<8x128xf32> -> vector<8x128xf32>
    %48 = vector.broadcast %46 : vector<8x1xf32> to vector<8x128xf32>
    %49 = vector.broadcast %4 : vector<1x128xf32> to vector<8x128xf32>
    %50 = arith.mulf %48, %49 : vector<8x128xf32>
    %51 = arith.addf %47, %50 : vector<8x128xf32>
    %52 = vector.broadcast %5 : vector<1x128xf32> to vector<8x128xf32>
    %53 = arith.addf %51, %52 : vector<8x128xf32>
    %54 = vector.extract_strided_slice %53 {offsets = [0, 0], sizes = [8, 32], strides = [1, 1]} : vector<8x128xf32> to vector<8x32xf32>
    %55 = arith.negf %54 : vector<8x32xf32>
    %56 = math.exp %55 : vector<8x32xf32>
    %cst_26 = arith.constant 1.000000e+00 : f32
    %57 = vector.broadcast %cst_26 : f32 to vector<8x32xf32>
    %58 = arith.addf %57, %56 : vector<8x32xf32>
    %59 = arith.divf %57, %58 : vector<8x32xf32>
    %60 = vector.extract_strided_slice %53 {offsets = [0, 32], sizes = [8, 32], strides = [1, 1]} : vector<8x128xf32> to vector<8x32xf32>
    %61 = arith.negf %60 : vector<8x32xf32>
    %62 = math.exp %61 : vector<8x32xf32>
    %cst_27 = arith.constant 1.000000e+00 : f32
    %63 = vector.broadcast %cst_27 : f32 to vector<8x32xf32>
    %64 = arith.addf %63, %62 : vector<8x32xf32>
    %65 = arith.divf %63, %64 : vector<8x32xf32>
    %66 = vector.extract_strided_slice %53 {offsets = [0, 96], sizes = [8, 32], strides = [1, 1]} : vector<8x128xf32> to vector<8x32xf32>
    %67 = vector.extract_strided_slice %53 {offsets = [0, 64], sizes = [8, 32], strides = [1, 1]} : vector<8x128xf32> to vector<8x32xf32>
    %68 = arith.mulf %59, %67 : vector<8x32xf32>
    %69 = arith.addf %66, %68 : vector<8x32xf32>
    %70 = math.tanh %69 : vector<8x32xf32>
    %cst_28 = arith.constant 1.000000e+00 : f32
    %71 = vector.broadcast %cst_28 : f32 to vector<8x32xf32>
    %72 = arith.subf %71, %65 : vector<8x32xf32>
    %73 = arith.mulf %72, %70 : vector<8x32xf32>
    %74 = arith.mulf %65, %40 : vector<8x32xf32>
    %75 = arith.addf %73, %74 : vector<8x32xf32>
    %c0_29 = arith.constant 0 : index
    %76 = arith.index_cast %c1_i32 : i32 to index
    %c0_30 = arith.constant 0 : index
    %c0_31 = arith.constant 0 : index
    %77 = vector.load %arg8[%c0_29, %76, %c0_30, %c0_31] : memref<1x8x8x32xf32, #tpu.memory_space<vmem>>, vector<1x1x8x32xf32>
    %78 = vector.shape_cast %77 : vector<1x1x8x32xf32> to vector<8x32xf32>
    %79 = vector.shape_cast %75 : vector<8x32xf32> to vector<1x1x8x32xf32>
    tpu.vector_store %arg8[%c0_29, %76, %c0_30, %c0_31], %79 {strides = array<i32>} : memref<1x8x8x32xf32, #tpu.memory_space<vmem>>, vector<1x1x8x32xf32>,
    %c2_i32 = arith.constant 2 : i32
    %c0_32 = arith.constant 0 : index
    %80 = arith.index_cast %c2_i32 : i32 to index
    %c0_33 = arith.constant 0 : index
    %c0_34 = arith.constant 0 : index
    %81 = vector.load %arg3[%c0_32, %80, %c0_33, %c0_34] : memref<1x8x8x1xf32, #tpu.memory_space<vmem>>, vector<1x1x8x1xf32>
    %82 = vector.shape_cast %81 : vector<1x1x8x1xf32> to vector<8x1xf32>
    %cst_35 = arith.constant dense<0.000000e+00> : vector<8x128xf32>
    %83 = tpu.matmul %75, %3, %cst_35 {dimension_numbers = #tpu.dot_dimension_numbers<[1], [0], [0], [1], [0, 0, 1, 1], [], []>} : vector<8x32xf32>, vector<32x128xf32>, vector<8x128xf32> -> vector<8x128xf32>
    %84 = vector.broadcast %82 : vector<8x1xf32> to vector<8x128xf32>
    %85 = vector.broadcast %4 : vector<1x128xf32> to vector<8x128xf32>
    %86 = arith.mulf %84, %85 : vector<8x128xf32>
    %87 = arith.addf %83, %86 : vector<8x128xf32>
    %88 = vector.broadcast %5 : vector<1x128xf32> to vector<8x128xf32>
    %89 = arith.addf %87, %88 : vector<8x128xf32>
    %90 = vector.extract_strided_slice %89 {offsets = [0, 0], sizes = [8, 32], strides = [1, 1]} : vector<8x128xf32> to vector<8x32xf32>
    %91 = arith.negf %90 : vector<8x32xf32>
    %92 = math.exp %91 : vector<8x32xf32>
    %cst_36 = arith.constant 1.000000e+00 : f32
    %93 = vector.broadcast %cst_36 : f32 to vector<8x32xf32>
    %94 = arith.addf %93, %92 : vector<8x32xf32>
    %95 = arith.divf %93, %94 : vector<8x32xf32>
    %96 = vector.extract_strided_slice %89 {offsets = [0, 32], sizes = [8, 32], strides = [1, 1]} : vector<8x128xf32> to vector<8x32xf32>
    %97 = arith.negf %96 : vector<8x32xf32>
    %98 = math.exp %97 : vector<8x32xf32>
    %cst_37 = arith.constant 1.000000e+00 : f32
    %99 = vector.broadcast %cst_37 : f32 to vector<8x32xf32>
    %100 = arith.addf %99, %98 : vector<8x32xf32>
    %101 = arith.divf %99, %100 : vector<8x32xf32>
    %102 = vector.extract_strided_slice %89 {offsets = [0, 96], sizes = [8, 32], strides = [1, 1]} : vector<8x128xf32> to vector<8x32xf32>
    %103 = vector.extract_strided_slice %89 {offsets = [0, 64], sizes = [8, 32], strides = [1, 1]} : vector<8x128xf32> to vector<8x32xf32>
    %104 = arith.mulf %95, %103 : vector<8x32xf32>
    %105 = arith.addf %102, %104 : vector<8x32xf32>
    %106 = math.tanh %105 : vector<8x32xf32>
    %cst_38 = arith.constant 1.000000e+00 : f32
    %107 = vector.broadcast %cst_38 : f32 to vector<8x32xf32>
    %108 = arith.subf %107, %101 : vector<8x32xf32>
    %109 = arith.mulf %108, %106 : vector<8x32xf32>
    %110 = arith.mulf %101, %75 : vector<8x32xf32>
    %111 = arith.addf %109, %110 : vector<8x32xf32>
    %c0_39 = arith.constant 0 : index
    %112 = arith.index_cast %c2_i32 : i32 to index
    %c0_40 = arith.constant 0 : index
    %c0_41 = arith.constant 0 : index
    %113 = vector.load %arg8[%c0_39, %112, %c0_40, %c0_41] : memref<1x8x8x32xf32, #tpu.memory_space<vmem>>, vector<1x1x8x32xf32>
    %114 = vector.shape_cast %113 : vector<1x1x8x32xf32> to vector<8x32xf32>
    %115 = vector.shape_cast %111 : vector<8x32xf32> to vector<1x1x8x32xf32>
    tpu.vector_store %arg8[%c0_39, %112, %c0_40, %c0_41], %115 {strides = array<i32>} : memref<1x8x8x32xf32, #tpu.memory_space<vmem>>, vector<1x1x8x32xf32>,
    %c3_i32 = arith.constant 3 : i32
    %c0_42 = arith.constant 0 : index
    %116 = arith.index_cast %c3_i32 : i32 to index
    %c0_43 = arith.constant 0 : index
    %c0_44 = arith.constant 0 : index
    %117 = vector.load %arg3[%c0_42, %116, %c0_43, %c0_44] : memref<1x8x8x1xf32, #tpu.memory_space<vmem>>, vector<1x1x8x1xf32>
    %118 = vector.shape_cast %117 : vector<1x1x8x1xf32> to vector<8x1xf32>
    %cst_45 = arith.constant dense<0.000000e+00> : vector<8x128xf32>
    %119 = tpu.matmul %111, %3, %cst_45 {dimension_numbers = #tpu.dot_dimension_numbers<[1], [0], [0], [1], [0, 0, 1, 1], [], []>} : vector<8x32xf32>, vector<32x128xf32>, vector<8x128xf32> -> vector<8x128xf32>
    %120 = vector.broadcast %118 : vector<8x1xf32> to vector<8x128xf32>
    %121 = vector.broadcast %4 : vector<1x128xf32> to vector<8x128xf32>
    %122 = arith.mulf %120, %121 : vector<8x128xf32>
    %123 = arith.addf %119, %122 : vector<8x128xf32>
    %124 = vector.broadcast %5 : vector<1x128xf32> to vector<8x128xf32>
    %125 = arith.addf %123, %124 : vector<8x128xf32>
    %126 = vector.extract_strided_slice %125 {offsets = [0, 0], sizes = [8, 32], strides = [1, 1]} : vector<8x128xf32> to vector<8x32xf32>
    %127 = arith.negf %126 : vector<8x32xf32>
    %128 = math.exp %127 : vector<8x32xf32>
    %cst_46 = arith.constant 1.000000e+00 : f32
    %129 = vector.broadcast %cst_46 : f32 to vector<8x32xf32>
    %130 = arith.addf %129, %128 : vector<8x32xf32>
    %131 = arith.divf %129, %130 : vector<8x32xf32>
    %132 = vector.extract_strided_slice %125 {offsets = [0, 32], sizes = [8, 32], strides = [1, 1]} : vector<8x128xf32> to vector<8x32xf32>
    %133 = arith.negf %132 : vector<8x32xf32>
    %134 = math.exp %133 : vector<8x32xf32>
    %cst_47 = arith.constant 1.000000e+00 : f32
    %135 = vector.broadcast %cst_47 : f32 to vector<8x32xf32>
    %136 = arith.addf %135, %134 : vector<8x32xf32>
    %137 = arith.divf %135, %136 : vector<8x32xf32>
    %138 = vector.extract_strided_slice %125 {offsets = [0, 96], sizes = [8, 32], strides = [1, 1]} : vector<8x128xf32> to vector<8x32xf32>
    %139 = vector.extract_strided_slice %125 {offsets = [0, 64], sizes = [8, 32], strides = [1, 1]} : vector<8x128xf32> to vector<8x32xf32>
    %140 = arith.mulf %131, %139 : vector<8x32xf32>
    %141 = arith.addf %138, %140 : vector<8x32xf32>
    %142 = math.tanh %141 : vector<8x32xf32>
    %cst_48 = arith.constant 1.000000e+00 : f32
    %143 = vector.broadcast %cst_48 : f32 to vector<8x32xf32>
    %144 = arith.subf %143, %137 : vector<8x32xf32>
    %145 = arith.mulf %144, %142 : vector<8x32xf32>
    %146 = arith.mulf %137, %111 : vector<8x32xf32>
    %147 = arith.addf %145, %146 : vector<8x32xf32>
    %c0_49 = arith.constant 0 : index
    %148 = arith.index_cast %c3_i32 : i32 to index
    %c0_50 = arith.constant 0 : index
    %c0_51 = arith.constant 0 : index
    %149 = vector.load %arg8[%c0_49, %148, %c0_50, %c0_51] : memref<1x8x8x32xf32, #tpu.memory_space<vmem>>, vector<1x1x8x32xf32>
    %150 = vector.shape_cast %149 : vector<1x1x8x32xf32> to vector<8x32xf32>
    %151 = vector.shape_cast %147 : vector<8x32xf32> to vector<1x1x8x32xf32>
    tpu.vector_store %arg8[%c0_49, %148, %c0_50, %c0_51], %151 {strides = array<i32>} : memref<1x8x8x32xf32, #tpu.memory_space<vmem>>, vector<1x1x8x32xf32>,
    %c4_i32 = arith.constant 4 : i32
    %c0_52 = arith.constant 0 : index
    %152 = arith.index_cast %c4_i32 : i32 to index
    %c0_53 = arith.constant 0 : index
    %c0_54 = arith.constant 0 : index
    %153 = vector.load %arg3[%c0_52, %152, %c0_53, %c0_54] : memref<1x8x8x1xf32, #tpu.memory_space<vmem>>, vector<1x1x8x1xf32>
    %154 = vector.shape_cast %153 : vector<1x1x8x1xf32> to vector<8x1xf32>
    %cst_55 = arith.constant dense<0.000000e+00> : vector<8x128xf32>
    %155 = tpu.matmul %147, %3, %cst_55 {dimension_numbers = #tpu.dot_dimension_numbers<[1], [0], [0], [1], [0, 0, 1, 1], [], []>} : vector<8x32xf32>, vector<32x128xf32>, vector<8x128xf32> -> vector<8x128xf32>
    %156 = vector.broadcast %154 : vector<8x1xf32> to vector<8x128xf32>
    %157 = vector.broadcast %4 : vector<1x128xf32> to vector<8x128xf32>
    %158 = arith.mulf %156, %157 : vector<8x128xf32>
    %159 = arith.addf %155, %158 : vector<8x128xf32>
    %160 = vector.broadcast %5 : vector<1x128xf32> to vector<8x128xf32>
    %161 = arith.addf %159, %160 : vector<8x128xf32>
    %162 = vector.extract_strided_slice %161 {offsets = [0, 0], sizes = [8, 32], strides = [1, 1]} : vector<8x128xf32> to vector<8x32xf32>
    %163 = arith.negf %162 : vector<8x32xf32>
    %164 = math.exp %163 : vector<8x32xf32>
    %cst_56 = arith.constant 1.000000e+00 : f32
    %165 = vector.broadcast %cst_56 : f32 to vector<8x32xf32>
    %166 = arith.addf %165, %164 : vector<8x32xf32>
    %167 = arith.divf %165, %166 : vector<8x32xf32>
    %168 = vector.extract_strided_slice %161 {offsets = [0, 32], sizes = [8, 32], strides = [1, 1]} : vector<8x128xf32> to vector<8x32xf32>
    %169 = arith.negf %168 : vector<8x32xf32>
    %170 = math.exp %169 : vector<8x32xf32>
    %cst_57 = arith.constant 1.000000e+00 : f32
    %171 = vector.broadcast %cst_57 : f32 to vector<8x32xf32>
    %172 = arith.addf %171, %170 : vector<8x32xf32>
    %173 = arith.divf %171, %172 : vector<8x32xf32>
    %174 = vector.extract_strided_slice %161 {offsets = [0, 96], sizes = [8, 32], strides = [1, 1]} : vector<8x128xf32> to vector<8x32xf32>
    %175 = vector.extract_strided_slice %161 {offsets = [0, 64], sizes = [8, 32], strides = [1, 1]} : vector<8x128xf32> to vector<8x32xf32>
    %176 = arith.mulf %167, %175 : vector<8x32xf32>
    %177 = arith.addf %174, %176 : vector<8x32xf32>
    %178 = math.tanh %177 : vector<8x32xf32>
    %cst_58 = arith.constant 1.000000e+00 : f32
    %179 = vector.broadcast %cst_58 : f32 to vector<8x32xf32>
    %180 = arith.subf %179, %173 : vector<8x32xf32>
    %181 = arith.mulf %180, %178 : vector<8x32xf32>
    %182 = arith.mulf %173, %147 : vector<8x32xf32>
    %183 = arith.addf %181, %182 : vector<8x32xf32>
    %c0_59 = arith.constant 0 : index
    %184 = arith.index_cast %c4_i32 : i32 to index
    %c0_60 = arith.constant 0 : index
    %c0_61 = arith.constant 0 : index
    %185 = vector.load %arg8[%c0_59, %184, %c0_60, %c0_61] : memref<1x8x8x32xf32, #tpu.memory_space<vmem>>, vector<1x1x8x32xf32>
    %186 = vector.shape_cast %185 : vector<1x1x8x32xf32> to vector<8x32xf32>
    %187 = vector.shape_cast %183 : vector<8x32xf32> to vector<1x1x8x32xf32>
    tpu.vector_store %arg8[%c0_59, %184, %c0_60, %c0_61], %187 {strides = array<i32>} : memref<1x8x8x32xf32, #tpu.memory_space<vmem>>, vector<1x1x8x32xf32>,
    %c5_i32 = arith.constant 5 : i32
    %c0_62 = arith.constant 0 : index
    %188 = arith.index_cast %c5_i32 : i32 to index
    %c0_63 = arith.constant 0 : index
    %c0_64 = arith.constant 0 : index
    %189 = vector.load %arg3[%c0_62, %188, %c0_63, %c0_64] : memref<1x8x8x1xf32, #tpu.memory_space<vmem>>, vector<1x1x8x1xf32>
    %190 = vector.shape_cast %189 : vector<1x1x8x1xf32> to vector<8x1xf32>
    %cst_65 = arith.constant dense<0.000000e+00> : vector<8x128xf32>
    %191 = tpu.matmul %183, %3, %cst_65 {dimension_numbers = #tpu.dot_dimension_numbers<[1], [0], [0], [1], [0, 0, 1, 1], [], []>} : vector<8x32xf32>, vector<32x128xf32>, vector<8x128xf32> -> vector<8x128xf32>
    %192 = vector.broadcast %190 : vector<8x1xf32> to vector<8x128xf32>
    %193 = vector.broadcast %4 : vector<1x128xf32> to vector<8x128xf32>
    %194 = arith.mulf %192, %193 : vector<8x128xf32>
    %195 = arith.addf %191, %194 : vector<8x128xf32>
    %196 = vector.broadcast %5 : vector<1x128xf32> to vector<8x128xf32>
    %197 = arith.addf %195, %196 : vector<8x128xf32>
    %198 = vector.extract_strided_slice %197 {offsets = [0, 0], sizes = [8, 32], strides = [1, 1]} : vector<8x128xf32> to vector<8x32xf32>
    %199 = arith.negf %198 : vector<8x32xf32>
    %200 = math.exp %199 : vector<8x32xf32>
    %cst_66 = arith.constant 1.000000e+00 : f32
    %201 = vector.broadcast %cst_66 : f32 to vector<8x32xf32>
    %202 = arith.addf %201, %200 : vector<8x32xf32>
    %203 = arith.divf %201, %202 : vector<8x32xf32>
    %204 = vector.extract_strided_slice %197 {offsets = [0, 32], sizes = [8, 32], strides = [1, 1]} : vector<8x128xf32> to vector<8x32xf32>
    %205 = arith.negf %204 : vector<8x32xf32>
    %206 = math.exp %205 : vector<8x32xf32>
    %cst_67 = arith.constant 1.000000e+00 : f32
    %207 = vector.broadcast %cst_67 : f32 to vector<8x32xf32>
    %208 = arith.addf %207, %206 : vector<8x32xf32>
    %209 = arith.divf %207, %208 : vector<8x32xf32>
    %210 = vector.extract_strided_slice %197 {offsets = [0, 96], sizes = [8, 32], strides = [1, 1]} : vector<8x128xf32> to vector<8x32xf32>
    %211 = vector.extract_strided_slice %197 {offsets = [0, 64], sizes = [8, 32], strides = [1, 1]} : vector<8x128xf32> to vector<8x32xf32>
    %212 = arith.mulf %203, %211 : vector<8x32xf32>
    %213 = arith.addf %210, %212 : vector<8x32xf32>
    %214 = math.tanh %213 : vector<8x32xf32>
    %cst_68 = arith.constant 1.000000e+00 : f32
    %215 = vector.broadcast %cst_68 : f32 to vector<8x32xf32>
    %216 = arith.subf %215, %209 : vector<8x32xf32>
    %217 = arith.mulf %216, %214 : vector<8x32xf32>
    %218 = arith.mulf %209, %183 : vector<8x32xf32>
    %219 = arith.addf %217, %218 : vector<8x32xf32>
    %c0_69 = arith.constant 0 : index
    %220 = arith.index_cast %c5_i32 : i32 to index
    %c0_70 = arith.constant 0 : index
    %c0_71 = arith.constant 0 : index
    %221 = vector.load %arg8[%c0_69, %220, %c0_70, %c0_71] : memref<1x8x8x32xf32, #tpu.memory_space<vmem>>, vector<1x1x8x32xf32>
    %222 = vector.shape_cast %221 : vector<1x1x8x32xf32> to vector<8x32xf32>
    %223 = vector.shape_cast %219 : vector<8x32xf32> to vector<1x1x8x32xf32>
    tpu.vector_store %arg8[%c0_69, %220, %c0_70, %c0_71], %223 {strides = array<i32>} : memref<1x8x8x32xf32, #tpu.memory_space<vmem>>, vector<1x1x8x32xf32>,
    %c6_i32 = arith.constant 6 : i32
    %c0_72 = arith.constant 0 : index
    %224 = arith.index_cast %c6_i32 : i32 to index
    %c0_73 = arith.constant 0 : index
    %c0_74 = arith.constant 0 : index
    %225 = vector.load %arg3[%c0_72, %224, %c0_73, %c0_74] : memref<1x8x8x1xf32, #tpu.memory_space<vmem>>, vector<1x1x8x1xf32>
    %226 = vector.shape_cast %225 : vector<1x1x8x1xf32> to vector<8x1xf32>
    %cst_75 = arith.constant dense<0.000000e+00> : vector<8x128xf32>
    %227 = tpu.matmul %219, %3, %cst_75 {dimension_numbers = #tpu.dot_dimension_numbers<[1], [0], [0], [1], [0, 0, 1, 1], [], []>} : vector<8x32xf32>, vector<32x128xf32>, vector<8x128xf32> -> vector<8x128xf32>
    %228 = vector.broadcast %226 : vector<8x1xf32> to vector<8x128xf32>
    %229 = vector.broadcast %4 : vector<1x128xf32> to vector<8x128xf32>
    %230 = arith.mulf %228, %229 : vector<8x128xf32>
    %231 = arith.addf %227, %230 : vector<8x128xf32>
    %232 = vector.broadcast %5 : vector<1x128xf32> to vector<8x128xf32>
    %233 = arith.addf %231, %232 : vector<8x128xf32>
    %234 = vector.extract_strided_slice %233 {offsets = [0, 0], sizes = [8, 32], strides = [1, 1]} : vector<8x128xf32> to vector<8x32xf32>
    %235 = arith.negf %234 : vector<8x32xf32>
    %236 = math.exp %235 : vector<8x32xf32>
    %cst_76 = arith.constant 1.000000e+00 : f32
    %237 = vector.broadcast %cst_76 : f32 to vector<8x32xf32>
    %238 = arith.addf %237, %236 : vector<8x32xf32>
    %239 = arith.divf %237, %238 : vector<8x32xf32>
    %240 = vector.extract_strided_slice %233 {offsets = [0, 32], sizes = [8, 32], strides = [1, 1]} : vector<8x128xf32> to vector<8x32xf32>
    %241 = arith.negf %240 : vector<8x32xf32>
    %242 = math.exp %241 : vector<8x32xf32>
    %cst_77 = arith.constant 1.000000e+00 : f32
    %243 = vector.broadcast %cst_77 : f32 to vector<8x32xf32>
    %244 = arith.addf %243, %242 : vector<8x32xf32>
    %245 = arith.divf %243, %244 : vector<8x32xf32>
    %246 = vector.extract_strided_slice %233 {offsets = [0, 96], sizes = [8, 32], strides = [1, 1]} : vector<8x128xf32> to vector<8x32xf32>
    %247 = vector.extract_strided_slice %233 {offsets = [0, 64], sizes = [8, 32], strides = [1, 1]} : vector<8x128xf32> to vector<8x32xf32>
    %248 = arith.mulf %239, %247 : vector<8x32xf32>
    %249 = arith.addf %246, %248 : vector<8x32xf32>
    %250 = math.tanh %249 : vector<8x32xf32>
    %cst_78 = arith.constant 1.000000e+00 : f32
    %251 = vector.broadcast %cst_78 : f32 to vector<8x32xf32>
    %252 = arith.subf %251, %245 : vector<8x32xf32>
    %253 = arith.mulf %252, %250 : vector<8x32xf32>
    %254 = arith.mulf %245, %219 : vector<8x32xf32>
    %255 = arith.addf %253, %254 : vector<8x32xf32>
    %c0_79 = arith.constant 0 : index
    %256 = arith.index_cast %c6_i32 : i32 to index
    %c0_80 = arith.constant 0 : index
    %c0_81 = arith.constant 0 : index
    %257 = vector.load %arg8[%c0_79, %256, %c0_80, %c0_81] : memref<1x8x8x32xf32, #tpu.memory_space<vmem>>, vector<1x1x8x32xf32>
    %258 = vector.shape_cast %257 : vector<1x1x8x32xf32> to vector<8x32xf32>
    %259 = vector.shape_cast %255 : vector<8x32xf32> to vector<1x1x8x32xf32>
    tpu.vector_store %arg8[%c0_79, %256, %c0_80, %c0_81], %259 {strides = array<i32>} : memref<1x8x8x32xf32, #tpu.memory_space<vmem>>, vector<1x1x8x32xf32>,
    %c7_i32 = arith.constant 7 : i32
    %c0_82 = arith.constant 0 : index
    %260 = arith.index_cast %c7_i32 : i32 to index
    %c0_83 = arith.constant 0 : index
    %c0_84 = arith.constant 0 : index
    %261 = vector.load %arg3[%c0_82, %260, %c0_83, %c0_84] : memref<1x8x8x1xf32, #tpu.memory_space<vmem>>, vector<1x1x8x1xf32>
    %262 = vector.shape_cast %261 : vector<1x1x8x1xf32> to vector<8x1xf32>
    %cst_85 = arith.constant dense<0.000000e+00> : vector<8x128xf32>
    %263 = tpu.matmul %255, %3, %cst_85 {dimension_numbers = #tpu.dot_dimension_numbers<[1], [0], [0], [1], [0, 0, 1, 1], [], []>} : vector<8x32xf32>, vector<32x128xf32>, vector<8x128xf32> -> vector<8x128xf32>
    %264 = vector.broadcast %262 : vector<8x1xf32> to vector<8x128xf32>
    %265 = vector.broadcast %4 : vector<1x128xf32> to vector<8x128xf32>
    %266 = arith.mulf %264, %265 : vector<8x128xf32>
    %267 = arith.addf %263, %266 : vector<8x128xf32>
    %268 = vector.broadcast %5 : vector<1x128xf32> to vector<8x128xf32>
    %269 = arith.addf %267, %268 : vector<8x128xf32>
    %270 = vector.extract_strided_slice %269 {offsets = [0, 0], sizes = [8, 32], strides = [1, 1]} : vector<8x128xf32> to vector<8x32xf32>
    %271 = arith.negf %270 : vector<8x32xf32>
    %272 = math.exp %271 : vector<8x32xf32>
    %cst_86 = arith.constant 1.000000e+00 : f32
    %273 = vector.broadcast %cst_86 : f32 to vector<8x32xf32>
    %274 = arith.addf %273, %272 : vector<8x32xf32>
    %275 = arith.divf %273, %274 : vector<8x32xf32>
    %276 = vector.extract_strided_slice %269 {offsets = [0, 32], sizes = [8, 32], strides = [1, 1]} : vector<8x128xf32> to vector<8x32xf32>
    %277 = arith.negf %276 : vector<8x32xf32>
    %278 = math.exp %277 : vector<8x32xf32>
    %cst_87 = arith.constant 1.000000e+00 : f32
    %279 = vector.broadcast %cst_87 : f32 to vector<8x32xf32>
    %280 = arith.addf %279, %278 : vector<8x32xf32>
    %281 = arith.divf %279, %280 : vector<8x32xf32>
    %282 = vector.extract_strided_slice %269 {offsets = [0, 96], sizes = [8, 32], strides = [1, 1]} : vector<8x128xf32> to vector<8x32xf32>
    %283 = vector.extract_strided_slice %269 {offsets = [0, 64], sizes = [8, 32], strides = [1, 1]} : vector<8x128xf32> to vector<8x32xf32>
    %284 = arith.mulf %275, %283 : vector<8x32xf32>
    %285 = arith.addf %282, %284 : vector<8x32xf32>
    %286 = math.tanh %285 : vector<8x32xf32>
    %cst_88 = arith.constant 1.000000e+00 : f32
    %287 = vector.broadcast %cst_88 : f32 to vector<8x32xf32>
    %288 = arith.subf %287, %281 : vector<8x32xf32>
    %289 = arith.mulf %288, %286 : vector<8x32xf32>
    %290 = arith.mulf %281, %255 : vector<8x32xf32>
    %291 = arith.addf %289, %290 : vector<8x32xf32>
    %c0_89 = arith.constant 0 : index
    %292 = arith.index_cast %c7_i32 : i32 to index
    %c0_90 = arith.constant 0 : index
    %c0_91 = arith.constant 0 : index
    %293 = vector.load %arg8[%c0_89, %292, %c0_90, %c0_91] : memref<1x8x8x32xf32, #tpu.memory_space<vmem>>, vector<1x1x8x32xf32>
    %294 = vector.shape_cast %293 : vector<1x1x8x32xf32> to vector<8x32xf32>
    %295 = vector.shape_cast %291 : vector<8x32xf32> to vector<1x1x8x32xf32>
    tpu.vector_store %arg8[%c0_89, %292, %c0_90, %c0_91], %295 {strides = array<i32>} : memref<1x8x8x32xf32, #tpu.memory_space<vmem>>, vector<1x1x8x32xf32>,
    %c7_i32_92 = arith.constant 7 : i32
    %c0_93 = arith.constant 0 : index
    %c0_94 = arith.constant 0 : index
    %296 = vector.load %arg9[%c0_93, %c0_94] : memref<8x32xf32, #tpu.memory_space<vmem>>, vector<8x32xf32>
    tpu.vector_store %arg9[%c0_93, %c0_94], %291 {strides = array<i32>} : memref<8x32xf32, #tpu.memory_space<vmem>>, vector<8x32xf32>,
    return
  }
  func.func @transform_0(%arg0: i32, %arg1: i32, %arg2: i32) -> (i32, i32, i32, i32) {
    %c0_i32 = arith.constant 0 : i32
    %c0_i32_0 = arith.constant 0 : i32
    return %arg0, %arg2, %arg1, %c0_i32 : i32, i32, i32, i32
  }
  func.func @transform_1(%arg0: i32, %arg1: i32, %arg2: i32) -> (i32, i32) {
    %c0_i32 = arith.constant 0 : i32
    %c0_i32_0 = arith.constant 0 : i32
    %c0_i32_1 = arith.constant 0 : i32
    return %c0_i32, %c0_i32_0 : i32, i32
  }
  func.func @transform_2(%arg0: i32, %arg1: i32, %arg2: i32) -> (i32, i32) {
    %c0_i32 = arith.constant 0 : i32
    %c0_i32_0 = arith.constant 0 : i32
    %c0_i32_1 = arith.constant 0 : i32
    return %c0_i32, %c0_i32_0 : i32, i32
  }
  func.func @transform_3(%arg0: i32, %arg1: i32, %arg2: i32) -> (i32, i32) {
    %c0_i32 = arith.constant 0 : i32
    %c0_i32_0 = arith.constant 0 : i32
    %c0_i32_1 = arith.constant 0 : i32
    return %c0_i32, %c0_i32_0 : i32, i32
  }
  func.func @transform_4(%arg0: i32, %arg1: i32, %arg2: i32) -> (i32, i32) {
    %c0_i32 = arith.constant 0 : i32
    %c0_i32_0 = arith.constant 0 : i32
    %c0_i32_1 = arith.constant 0 : i32
    return %c0_i32, %c0_i32_0 : i32, i32
  }
  func.func @transform_5(%arg0: i32, %arg1: i32, %arg2: i32) -> (i32, i32, i32, i32) {
    %c0_i32 = arith.constant 0 : i32
    %c0_i32_0 = arith.constant 0 : i32
    return %arg0, %arg2, %arg1, %c0_i32 : i32, i32, i32, i32
  }
}

</mosaic_0001>

<bundles_post_ra>
// kernel: tpu_custom_call.1
= control target key start
LH: loop header
LB: loop body
LE: loop exit
PB: predicated region body
PF: predicated region fallthrough
CT: control target
= control target key end

     0   :  { %10 = vsyncpa [#allocation4], 0  ;;  %s2054_s0 = inlined_call_operand.vmem [shape: f32[2,8,8,1], index: 0, kind: input, shape index: {}]   ;;  %s2055_s1 = inlined_call_operand.vmem [shape: f32[32,128], index: 1, kind: input, shape index: {}]   ;;  %s2056_s2 = inlined_call_operand.vmem [shape: f32[1,128], index: 2, kind: input, shape index: {}]   ;;  %s2057_s3 = inlined_call_operand.vmem [shape: f32[1,128], index: 3, kind: input, shape index: {}]   ;;  %s2058_s4 = inlined_call_operand.vmem [shape: f32[1,128], index: 4, kind: input, shape index: {}]   ;;  %s2059_s5 = inlined_call_operand.hbm [shape: f32[2,8,8,32], index: 5, kind: output, shape index: {}]  }
   0x1   :  { %12 = vsyncpa [#allocation4 + $0x1], 0  ;;  %s1771_s18 = smov 0   ;;  %s1773_s19 = smov 0  }
   0x2   :  { %s1775_s20 = smov 0   ;;  %s1777_s21 = smov 0  }
   0x3   :  { %s1779_s22 = smov 0   ;;  %s1781_s23 = smov 0  }
   0x4 LB: > { %s1313_s24 = sadd.s32 4294967295, %s1729_s23   ;;  %s1314_s25 = sadd.s32 4294967294, %s1729_s23   ;;  %s1729_s23 = sphi %s1781_s23, %s18_s23   ;;  %s1725_s22 = sphi %s1779_s22, %s2066_s22   ;;  %s1721_s21 = sphi %s1777_s21, %s2065_s21   ;;  %s1717_s20 = sphi %s1775_s20, %s2064_s20   ;;  %s1713_s19 = sphi %s1773_s19, %s2063_s19   ;;  %s1709_s18 = sphi %s1771_s18, %s2062_s18  }
   0x5   : > { %s37_s26 = sadd.s32 1, %s1725_s22  ;;  %s162_s27 = sadd.s32 1, %s1717_s20 }
   0x6   : > { %p39_p0 = scmp.ge.s32.totalorder %s37_s26, 2  ;;  %p172_p1 = scmp.ne.s32.totalorder %s1717_s20, %s1713_s19 }
   0x7   : > { %p173_p2 = scmp.eq.s32.totalorder %s1313_s24, 1  ;;  %p178_p3 = scmp.ne.s32.totalorder %s1713_s19, %s1709_s18 }
   0x8   : > { %s2068_s26 = smov (%p39_p0, %s37_s26), 0  ;;  %p179_p5 = scmp.eq.s32.totalorder %s1314_s25, 1 }
   0x9   : > { %p1811_p4 = por %p173_p2, %p172_p1  ;;  %s155_s29 = ssub.s32 %s1725_s22, %s2068_s26 }
   0xa   : > { %p1317_p6 = scmp.ge.s32.totalorder %s1729_s23, 1  ;;  %p160_p7 = scmp.eq.s32.totalorder %s155_s29, 0 }
   0xb   : > { %p1818_p8 = por %p179_p5, %p178_p3  ;;  %p225_p9 = scmp.lt.s32.totalorder %s1729_s23, 3 }
   0xc   : > { %s1824_s6 = scalar_select %p160_p7, %s1717_s20, %s162_s27  }
   0xd   : > { %p226_p10 = pnand %p1317_p6, %p225_p9 }
   0xe   : > { %v280_v0 = vld [vmem:[%s2055_s1] sm:$0xff] (!%p226_p10)  ;;  %v281_v1 = vld [vmem:[%s2055_s1 + $0x8] sm:$0xff] (!%p226_p10)  ;;  %v282_v2 = vld [vmem:[%s2055_s1 + $0x10] sm:$0xff] (!%p226_p10)  ;;  %v1731_v3 = vmov (!%p226_p10), 0.0|0.0   ;;  %vm1732_vm0 = vmmov (!%p226_p10), 0   ;;  %v1733_v6 = vmov (!%p226_p10), 0.0  }
   0xf   : > { %229 = sbr.rel (%p226_p10) target bundleno = 5599 (0x15df), region = 40  ;;  %1489 = vmatprep.subr.bf16.mxu0 (!%p226_p10), %v1731_v3  ;;  %v1836_v4 = vpack.c.bf16 (!%p226_p10), %v281_v1, %v280_v0  ;;  %v283_v5 = vld [vmem:[%s2055_s1 + $0x18] sm:$0xff] (!%p226_p10)  ;;  %1409 = vmatprep.mubr.msk.f32.mxu0 (!%p226_p10), %vm1732_vm0, %v1733_v6  ;;  %vm278_vm1 = vcmask (!%p226_p10), 261120   ;;  %p261_p11 = scmp.lt.s32.totalorder (!%p226_p10), %s1721_s21, 1  ;;  %v1734_v7 = vmov (!%p226_p10), 0  }
  0x10   : > { %279 = vst.msk [vmem:[#allocation2] sm:$0xff] (!%p226_p10), %vm278_vm1, %v1733_v6  ;;  %1601 = vset.pattern.permute.xlu0 (!%p226_p10), %v1734_v7  ;;  %1495 = vmatprep.subr.bf16.mxu1 (!%p226_p10), %v1731_v3  ;;  %v1848_v8 = vpack.c.bf16 (!%p226_p10), %v283_v5, %v282_v2  ;;  %v1876_v11 = vld [vmem:[%s2056_s2] ss:$0 sm:$0xff] (!%p226_p10)  ;;  %s1735_s9 = smov (!%p226_p10), 64   ;;  %s1736_s10 = smov (!%p226_p10), 32  }
  0x11   : > { %1491 = vmatpush3.bf16.msra.mxu0 (!%p226_p10), %v1836_v4  ;;  %1497 = vmatpush3.bf16.msra.mxu1 (!%p226_p10), %v1836_v4  ;;  %v1323_v14 = vld [vmem:[%s2057_s3] ss:$0 sm:$0xff] (!%p226_p10)  ;;  %s1737_s11 = smov (!%p226_p10), 96   ;;  %s257_s12 = sand.u32 (!%p226_p10), 1, %s1713_s19  }
  0x12   : > { %1492 = vmatprep.subr.bf16.mxu0 (!%p226_p10), %v1731_v3  ;;  %1498 = vmatprep.subr.bf16.mxu1 (!%p226_p10), %v1731_v3  ;;  %s1318_s13 = sshll.u32 (!%p226_p10), %s257_s12, 6  ;;  %v1905_v38 = vld [vmem:[%s2058_s4] ss:$0 sm:$0xff] (!%p226_p10)  ;;  %s1360_s17 = sshll.u32 (!%p226_p10), %s1721_s21, 10 }
  0x13   : > { %1420 = vmatprep.mubr.msk.f32.mxu1 (!%p226_p10), %vm1732_vm0, %v1733_v6  ;;  %1602 = vset.pattern.permute.xlu1 (!%p226_p10), %v1734_v7  ;;  %s1890_s14 = scalar_lea.vmem (!%p226_p10), [#allocation3], %s1318_s13  ;;  %s1999_s29 = scalar_lea.hbm (!%p226_p10), %s2059_s5, %s1360_s17 }
  0x14   : > { %s1227_s24 = sshll.u32 (!%p226_p10), %s1890_s14, 4  ;;  %s2008_s7 = scalar_lea.sflag (!%p226_p10), [#allocation4], %s257_s12  ;;  %s2001_s24 = int_to_ptr.vmem [resolvable:$true] %s1227_s24 }
  0x15   : > { %1494 = vmatpush3.bf16.msra.mxu0 (!%p226_p10), %v1848_v8  ;;  %1500 = vmatpush3.bf16.msra.mxu1 (!%p226_p10), %v1848_v8  ;;  %s1738_s8 = smov (!%p226_p10), [#allocation3]  }
  0x16   : > { %s262_s15 = scalar_select %p261_p11, %s1721_s21, 1  ;;  %1501 = vmatprep.subr.bf16.mxu0 %v1731_v3  ;;  %1507 = vmatprep.subr.bf16.mxu1 %v1731_v3 }
  0x17   : > { %v291_v10 = vld [vmem:[#allocation2] sm:$0xff]  ;;  %s1651_s21 = scalar_lea.vmem %s2001_s24, 1024 }
  0x18   : > { %s1359_s16 = sshll.u32 %s262_s15, 6  ;;  %1410 = vmatmul.mubr.msk.f32.vlgmr.msra.gmra.mrb[0].mxu0 %vm278_vm1, %v291_v10  ;;  %p1652_p12 = scmp.ne.s32.totalorder %s2001_s24, %s1651_s21 }
  0x19   : > { %s1859_s25 = scalar_lea.vmem %s2054_s0, %s1359_s16  ;;  %1503 = vmatpush3.bf16.msra.mxu0 %v1836_v4  ;;  %1431 = vmatprep.mubr.msk.f32.mxu0 %vm1732_vm0, %v1733_v6 }
  0x1a   : > { %v292_v9 = vld [vmem:[%s1859_s25] sm:$0xff]  ;;  %1504 = vmatprep.subr.bf16.mxu0 %v1731_v3  ;;  %v1325_v19 = vld [vmem:[%s1859_s25 + $0x8] sm:$0xff]  ;;  %v1330_v52 = vld [vmem:[%s1859_s25 + $0x10] sm:$0xff]  ;;  %p1653_p13 = pnand %p1652_p12, %p1811_p4 }
  0x1b   : > { %295 = vperm.xlu0 %1601, %v292_v9  }
  0x1c   : > { %p1654_p0 = pneg %p1653_p13 }
  0x1d   : > { %1506 = vmatpush3.bf16.msra.mxu0 %v1848_v8 }
  0x1e   : > { %1513 = vmatprep.subr.bf16.mxu0 %v1731_v3 }
  0x9a   : > { %v296_v12 = vpop.permute.xlu0 %295 }
  0x9b   : > { %v304_v13 = vmul.f32 %v1876_v11, %v296_v12 }
  0xeb   : > { %v375_v15 = vpop.f32.mrb[0].mxu0 }
  0xec   : > { %v376_v16 = vadd.f32 %v375_v15, %v304_v13  ;;  %v1411_v17 = vpop.f32.mrb[1].mxu0  ;;  %v1334_v15 = vld [vmem:[%s1859_s25 + $0x18] sm:$0xff] }
  0xee   : > { %v385_v18 = vadd.f32 %v1323_v14, %v376_v16 }
  0xf0   : > { %393 = vrot.lane.b32.xlu0 %v385_v18, %s1735_s9  ;;  %v1324_v20 = vmul.f32 -1.442695, %v385_v18 }
  0xf2   : > { %1603 = vpow2.f32 %v1324_v20 }
  0xf4   : > { %409 = vrot.lane.b32.xlu0 %v291_v10, %s1736_s10 }
  0xf8   : > { %423 = vperm.xlu0 %1601, %v1325_v19  }
  0xfc   : > { %v1604_v21 = vpop.eup %1603 }
  0xfd   : > { %v389_v22 = vadd.f32 1.0, %v1604_v21 }
  0xff   : > { %1605 = vrcp.f32 %v389_v22 }
 0x109   : > { %v1606_v23 = vpop.eup %1605 }
 0x10a   : > { %v403_v30 = vsub.f32 1.0, %v1606_v23 }
 0x162   : > { %v394_v24 = vpop.permute.xlu0 %393 }
 0x163   : > { %v396_v25 = vmul.f32 %v1606_v23, %v394_v24 }
 0x165   : > { %398 = vrot.lane.b32.xlu1 %v396_v25, %s1737_s11 }
 0x166   : > { %v410_v29 = vpop.permute.xlu0 %409 }
 0x167   : > { %v412_v32 = vmul.f32 %v1606_v23, %v410_v29 }
 0x177   : > { %v424_v36 = vpop.permute.xlu0 %423 }
 0x178   : > { %v426_v37 = vmul.f32 %v1876_v11, %v424_v36 }
 0x1d7   : > { %v399_v26 = vpop.permute.xlu1 %398 }
 0x1d8   : > { %v401_v27 = vadd.f32 %v399_v26, %v385_v18 }
 0x1da   : > { %1607 = vtanh.f32 %v401_v27 }
 0x1e4   : > { %v1608_v28 = vpop.eup %1607 }
 0x1e5   : > { %405 = vrot.lane.b32.xlu1 %v1608_v28, %s1735_s9 }
 0x257   : > { %v406_v31 = vpop.permute.xlu1 %405 }
 0x258   : > { %v408_v33 = vmul.f32 %v406_v31, %v403_v30 }
 0x25a   : > { %v413_v34 = vadd.f32 %v412_v32, %v408_v33 }
 0x25c   : > { %415 = vrot.lane.b32.xlu1 %v413_v34, %s1737_s11 }
 0x2ce   : > { %v416_v35 = vpop.permute.xlu1 %415 }
 0x2cf   : > { %418 = vst.msk [vmem:[%s1890_s14] sm:$0xff] %vm278_vm1, %v416_v35  ;;  %1421 = vmatmul.mubr.msk.f32.vlgmr.msra.gmra.mrb[0].mxu1 %vm278_vm1, %v416_v35 }
 0x2d0   : > { %1509 = vmatpush3.bf16.msra.mxu1 %v1836_v4  ;;  %1442 = vmatprep.mubr.msk.f32.mxu1 %vm1732_vm0, %v1733_v6 }
 0x2d1   : > { %1510 = vmatprep.subr.bf16.mxu1 %v1731_v3 }
 0x2d4   : > { %1512 = vmatpush3.bf16.msra.mxu1 %v1848_v8 }
 0x2d5   : > { %1519 = vmatprep.subr.bf16.mxu1 %v1731_v3 }
 0x3a2   : > { %v495_v39 = vpop.f32.mrb[0].mxu1 }
 0x3a3   : > { %v496_v40 = vadd.f32 %v495_v39, %v426_v37  ;;  %v1422_v41 = vpop.f32.mrb[1].mxu1  ;;  %v1338_v37 = vld [vmem:[%s1859_s25 + $0x20] sm:$0xff] }
 0x3a5   : > { %v505_v42 = vadd.f32 %v1905_v38, %v496_v40 }
 0x3a7   : > { %513 = vrot.lane.b32.xlu1 %v505_v42, %s1735_s9  ;;  %v1328_v43 = vmul.f32 -1.442695, %v505_v42 }
 0x3a9   : > { %1609 = vpow2.f32 %v1328_v43 }
 0x3b3   : > { %v1610_v44 = vpop.eup %1609 }
 0x3b4   : > { %v509_v45 = vadd.f32 1.0, %v1610_v44 }
 0x3b6   : > { %1611 = vrcp.f32 %v509_v45 }
 0x3c0   : > { %v1612_v46 = vpop.eup %1611 }
 0x3c1   : > { %v523_v53 = vsub.f32 1.0, %v1612_v46  ;;  %v529_v55 = vmul.f32 %v1612_v46, %v413_v34 }
 0x419   : > { %v514_v47 = vpop.permute.xlu1 %513 }
 0x41a   : > { %v516_v48 = vmul.f32 %v1612_v46, %v514_v47 }
 0x41c   : > { %518 = vrot.lane.b32.xlu0 %v516_v48, %s1737_s11 }
 0x48e   : > { %v519_v49 = vpop.permute.xlu0 %518 }
 0x48f   : > { %v521_v50 = vadd.f32 %v519_v49, %v505_v42 }
 0x491   : > { %1613 = vtanh.f32 %v521_v50 }
 0x49b   : > { %v1614_v51 = vpop.eup %1613 }
 0x49c   : > { %525 = vrot.lane.b32.xlu1 %v1614_v51, %s1735_s9 }
 0x4a0   : > { %541 = vperm.xlu1 %1602, %v1330_v52  }
 0x50e   : > { %v526_v54 = vpop.permute.xlu1 %525 }
 0x50f   : > { %v528_v56 = vmul.f32 %v526_v54, %v523_v53 }
 0x511   : > { %v530_v57 = vadd.f32 %v529_v55, %v528_v56 }
 0x513   : > { %532 = vrot.lane.b32.xlu0 %v530_v57, %s1737_s11 }
 0x51f   : > { %v542_v59 = vpop.permute.xlu1 %541 }
 0x520   : > { %v544_v60 = vmul.f32 %v1876_v11, %v542_v59 }
 0x585   : > { %v533_v58 = vpop.permute.xlu0 %532 }
 0x586   : > { %1329 = vst.msk [vmem:[%s1890_s14 + $0x8] sm:$0xff] %vm278_vm1, %v533_v58  ;;  %1432 = vmatmul.mubr.msk.f32.vlgmr.msra.gmra.mrb[2].mxu0 %vm278_vm1, %v533_v58 }
 0x587   : > { %1515 = vmatpush3.bf16.msra.mxu0 %v1836_v4  ;;  %1453 = vmatprep.mubr.msk.f32.mxu0 %vm1732_vm0, %v1733_v6 }
 0x588   : > { %1516 = vmatprep.subr.bf16.mxu0 %v1731_v3 }
 0x58b   : > { %1518 = vmatpush3.bf16.msra.mxu0 %v1848_v8 }
 0x58c   : > { %1525 = vmatprep.subr.bf16.mxu0 %v1731_v3 }
 0x659   : > { %v613_v61 = vpop.f32.mrb[2].mxu0 }
 0x65a   : > { %v614_v62 = vadd.f32 %v613_v61, %v544_v60  ;;  %v1433_v63 = vpop.f32.mrb[3].mxu0  ;;  %v1342_v60 = vld [vmem:[%s1859_s25 + $0x28] sm:$0xff] }
 0x65c   : > { %v617_v0 = vadd.f32 %v1905_v38, %v614_v62 }
 0x65e   : > { %625 = vrot.lane.b32.xlu0 %v617_v0, %s1735_s9  ;;  %v1332_v1 = vmul.f32 -1.442695, %v617_v0 }
 0x660   : > { %1615 = vpow2.f32 %v1332_v1 }
 0x66a   : > { %v1616_v2 = vpop.eup %1615 }
 0x66b   : > { %v621_v5 = vadd.f32 1.0, %v1616_v2 }
 0x66d   : > { %1617 = vrcp.f32 %v621_v5 }
 0x677   : > { %v1618_v7 = vpop.eup %1617 }
 0x678   : > { %v635_v16 = vsub.f32 1.0, %v1618_v7  ;;  %v641_v18 = vmul.f32 %v1618_v7, %v530_v57 }
 0x6d0   : > { %v626_v9 = vpop.permute.xlu0 %625 }
 0x6d1   : > { %v628_v10 = vmul.f32 %v1618_v7, %v626_v9 }
 0x6d3   : > { %630 = vrot.lane.b32.xlu1 %v628_v10, %s1737_s11 }
 0x745   : > { %v631_v12 = vpop.permute.xlu1 %630 }
 0x746   : > { %v633_v13 = vadd.f32 %v631_v12, %v617_v0 }
 0x748   : > { %1619 = vtanh.f32 %v633_v13 }
 0x752   : > { %v1620_v14 = vpop.eup %1619 }
 0x753   : > { %637 = vrot.lane.b32.xlu0 %v1620_v14, %s1735_s9 }
 0x757   : > { %653 = vperm.xlu0 %1601, %v1334_v15  }
 0x7c5   : > { %v638_v17 = vpop.permute.xlu0 %637 }
 0x7c6   : > { %v640_v19 = vmul.f32 %v638_v17, %v635_v16 }
 0x7c8   : > { %v642_v20 = vadd.f32 %v641_v18, %v640_v19  ;;  %v1346_v19 = vld [vmem:[%s1859_s25 + $0x30] sm:$0xff] }
 0x7ca   : > { %644 = vrot.lane.b32.xlu1 %v642_v20, %s1737_s11 }
 0x7d6   : > { %v654_v22 = vpop.permute.xlu0 %653 }
 0x7d7   : > { %v656_v23 = vmul.f32 %v1876_v11, %v654_v22 }
 0x83c   : > { %v645_v21 = vpop.permute.xlu1 %644 }
 0x83d   : > { %1333 = vst.msk [vmem:[%s1890_s14 + $0x10] sm:$0xff] %vm278_vm1, %v645_v21  ;;  %1443 = vmatmul.mubr.msk.f32.vlgmr.msra.gmra.mrb[2].mxu1 %vm278_vm1, %v645_v21 }
 0x83e   : > { %1521 = vmatpush3.bf16.msra.mxu1 %v1836_v4  ;;  %1464 = vmatprep.mubr.msk.f32.mxu1 %vm1732_vm0, %v1733_v6 }
 0x83f   : > { %1522 = vmatprep.subr.bf16.mxu1 %v1731_v3 }
 0x842   : > { %1524 = vmatpush3.bf16.msra.mxu1 %v1848_v8 }
 0x843   : > { %1531 = vmatprep.subr.bf16.mxu1 %v1731_v3 }
 0x910   : > { %v725_v24 = vpop.f32.mrb[2].mxu1 }
 0x911   : > { %v726_v25 = vadd.f32 %v725_v24, %v656_v23  ;;  %v1444_v26 = vpop.f32.mrb[3].mxu1 }
 0x913   : > { %v729_v27 = vadd.f32 %v1905_v38, %v726_v25 }
 0x915   : > { %737 = vrot.lane.b32.xlu1 %v729_v27, %s1735_s9  ;;  %v1336_v28 = vmul.f32 -1.442695, %v729_v27 }
 0x917   : > { %1621 = vpow2.f32 %v1336_v28 }
 0x921   : > { %v1622_v29 = vpop.eup %1621 }
 0x922   : > { %v733_v30 = vadd.f32 1.0, %v1622_v29 }
 0x924   : > { %1623 = vrcp.f32 %v733_v30 }
 0x92e   : > { %v1624_v31 = vpop.eup %1623 }
 0x92f   : > { %v747_v39 = vsub.f32 1.0, %v1624_v31  ;;  %v753_v41 = vmul.f32 %v1624_v31, %v642_v20 }
 0x987   : > { %v738_v32 = vpop.permute.xlu1 %737 }
 0x988   : > { %v740_v33 = vmul.f32 %v1624_v31, %v738_v32 }
 0x98a   : > { %742 = vrot.lane.b32.xlu0 %v740_v33, %s1737_s11 }
 0x9fc   : > { %v743_v34 = vpop.permute.xlu0 %742 }
 0x9fd   : > { %v745_v35 = vadd.f32 %v743_v34, %v729_v27 }
 0x9ff   : > { %1625 = vtanh.f32 %v745_v35 }
 0xa09   : > { %v1626_v36 = vpop.eup %1625 }
 0xa0a   : > { %749 = vrot.lane.b32.xlu1 %v1626_v36, %s1735_s9 }
 0xa0e   : > { %765 = vperm.xlu1 %1602, %v1338_v37  }
 0xa7c   : > { %v750_v40 = vpop.permute.xlu1 %749 }
 0xa7d   : > { %v752_v42 = vmul.f32 %v750_v40, %v747_v39 }
 0xa7f   : > { %v754_v43 = vadd.f32 %v753_v41, %v752_v42  ;;  %v1350_v42 = vld [vmem:[%s1859_s25 + $0x38] sm:$0xff] }
 0xa81   : > { %756 = vrot.lane.b32.xlu0 %v754_v43, %s1737_s11 }
 0xa8d   : > { %v766_v45 = vpop.permute.xlu1 %765 }
 0xa8e   : > { %v768_v46 = vmul.f32 %v1876_v11, %v766_v45 }
 0xaf3   : > { %v757_v44 = vpop.permute.xlu0 %756 }
 0xaf4   : > { %1337 = vst.msk [vmem:[%s1890_s14 + $0x18] sm:$0xff] %vm278_vm1, %v757_v44  ;;  %1454 = vmatmul.mubr.msk.f32.vlgmr.msra.gmra.mrb[4].mxu0 %vm278_vm1, %v757_v44 }
 0xaf5   : > { %1527 = vmatpush3.bf16.msra.mxu0 %v1836_v4  ;;  %1475 = vmatprep.mubr.msk.f32.mxu0 %vm1732_vm0, %v1733_v6 }
 0xaf6   : > { %1528 = vmatprep.subr.bf16.mxu0 %v1731_v3 }
 0xaf9   : > { %1530 = vmatpush3.bf16.msra.mxu0 %v1848_v8 }
 0xbc7   : > { %v837_v47 = vpop.f32.mrb[4].mxu0 }
 0xbc8   : > { %v838_v48 = vadd.f32 %v837_v47, %v768_v46  ;;  %v1455_v49 = vpop.f32.mrb[5].mxu0 }
 0xbca   : > { %v841_v50 = vadd.f32 %v1905_v38, %v838_v48 }
 0xbcc   : > { %849 = vrot.lane.b32.xlu0 %v841_v50, %s1735_s9  ;;  %v1340_v51 = vmul.f32 -1.442695, %v841_v50 }
 0xbce   : > { %1627 = vpow2.f32 %v1340_v51 }
 0xbd8   : > { %v1628_v52 = vpop.eup %1627 }
 0xbd9   : > { %v845_v53 = vadd.f32 1.0, %v1628_v52 }
 0xbdb   : > { %1629 = vrcp.f32 %v845_v53 }
 0xbe5   : > { %v1630_v54 = vpop.eup %1629 }
 0xbe6   : > { %v859_v61 = vsub.f32 1.0, %v1630_v54  ;;  %v865_v63 = vmul.f32 %v1630_v54, %v754_v43 }
 0xc3e   : > { %v850_v55 = vpop.permute.xlu0 %849 }
 0xc3f   : > { %v852_v56 = vmul.f32 %v1630_v54, %v850_v55 }
 0xc41   : > { %854 = vrot.lane.b32.xlu1 %v852_v56, %s1737_s11 }
 0xcb3   : > { %v855_v57 = vpop.permute.xlu1 %854 }
 0xcb4   : > { %v857_v58 = vadd.f32 %v855_v57, %v841_v50 }
 0xcb6   : > { %1631 = vtanh.f32 %v857_v58 }
 0xcc0   : > { %v1632_v59 = vpop.eup %1631 }
 0xcc1   : > { %861 = vrot.lane.b32.xlu0 %v1632_v59, %s1735_s9 }
 0xcc5   : > { %877 = vperm.xlu0 %1601, %v1342_v60  }
 0xd33   : > { %v862_v62 = vpop.permute.xlu0 %861 }
 0xd34   : > { %v864_v0 = vmul.f32 %v862_v62, %v859_v61 }
 0xd36   : > { %v866_v1 = vadd.f32 %v865_v63, %v864_v0 }
 0xd38   : > { %868 = vrot.lane.b32.xlu1 %v866_v1, %s1737_s11 }
 0xd44   : > { %v878_v5 = vpop.permute.xlu0 %877 }
 0xd45   : > { %v880_v7 = vmul.f32 %v1876_v11, %v878_v5 }
 0xdaa   : > { %v869_v2 = vpop.permute.xlu1 %868 }
 0xdab   : > { %1341 = vst.msk [vmem:[%s1890_s14 + $0x20] sm:$0xff] %vm278_vm1, %v869_v2  ;;  %1465 = vmatmul.mubr.msk.f32.vlgmr.msra.gmra.mrb[4].mxu1 %vm278_vm1, %v869_v2 }
 0xdac   : > { %1533 = vmatpush3.bf16.msra.mxu1 %v1836_v4  ;;  %1486 = vmatprep.mubr.msk.f32.mxu1 %vm1732_vm0, %v1733_v6 }
 0xdad   : > { %1534 = vmatprep.subr.bf16.mxu1 %v1731_v3 }
 0xdb0   : > { %1536 = vmatpush3.bf16.msra.mxu1 %v1848_v8 }
 0xe7e   : > { %v949_v9 = vpop.f32.mrb[4].mxu1 }
 0xe7f   : > { %v950_v10 = vadd.f32 %v949_v9, %v880_v7  ;;  %v1466_v12 = vpop.f32.mrb[5].mxu1 }
 0xe81   : > { %v953_v13 = vadd.f32 %v1905_v38, %v950_v10 }
 0xe83   : > { %961 = vrot.lane.b32.xlu1 %v953_v13, %s1735_s9  ;;  %v1344_v14 = vmul.f32 -1.442695, %v953_v13 }
 0xe85   : > { %1633 = vpow2.f32 %v1344_v14 }
 0xe8f   : > { %v1634_v4 = vpop.eup %1633 }
 0xe90   : > { %v957_v15 = vadd.f32 1.0, %v1634_v4 }
 0xe92   : > { %1635 = vrcp.f32 %v957_v15 }
 0xe9c   : > { %v1636_v6 = vpop.eup %1635 }
 0xe9d   : > { %v971_v20 = vsub.f32 1.0, %v1636_v6  ;;  %v977_v22 = vmul.f32 %v1636_v6, %v866_v1 }
 0xef5   : > { %v962_v3 = vpop.permute.xlu1 %961 }
 0xef6   : > { %v964_v16 = vmul.f32 %v1636_v6, %v962_v3 }
 0xef8   : > { %966 = vrot.lane.b32.xlu0 %v964_v16, %s1737_s11 }
 0xf6a   : > { %v967_v8 = vpop.permute.xlu0 %966 }
 0xf6b   : > { %v969_v17 = vadd.f32 %v967_v8, %v953_v13 }
 0xf6d   : > { %1637 = vtanh.f32 %v969_v17 }
 0xf77   : > { %v1638_v18 = vpop.eup %1637 }
 0xf78   : > { %973 = vrot.lane.b32.xlu1 %v1638_v18, %s1735_s9 }
 0xf7c   : > { %989 = vperm.xlu1 %1602, %v1346_v19  }
 0xfea   : > { %v974_v21 = vpop.permute.xlu1 %973 }
 0xfeb   : > { %v976_v23 = vmul.f32 %v974_v21, %v971_v20 }
 0xfed   : > { %v978_v24 = vadd.f32 %v977_v22, %v976_v23 }
 0xfef   : > { %980 = vrot.lane.b32.xlu0 %v978_v24, %s1737_s11 }
 0xffb   : > { %v990_v26 = vpop.permute.xlu1 %989 }
 0xffc   : > { %v992_v27 = vmul.f32 %v1876_v11, %v990_v26 }
0x1061   : > { %v981_v25 = vpop.permute.xlu0 %980 }
0x1062   : > { %1345 = vst.msk [vmem:[%s1890_s14 + $0x28] sm:$0xff] %vm278_vm1, %v981_v25  ;;  %1476 = vmatmul.mubr.msk.f32.vlgmr.msra.gmra.mrb[6].mxu0 %vm278_vm1, %v981_v25 }
0x1135   : > { %v1061_v28 = vpop.f32.mrb[6].mxu0 }
0x1136   : > { %v1062_v29 = vadd.f32 %v1061_v28, %v992_v27  ;;  %v1477_v30 = vpop.f32.mrb[7].mxu0 }
0x1138   : > { %v1065_v31 = vadd.f32 %v1905_v38, %v1062_v29 }
0x113a   : > { %1073 = vrot.lane.b32.xlu0 %v1065_v31, %s1735_s9  ;;  %v1348_v32 = vmul.f32 -1.442695, %v1065_v31 }
0x113c   : > { %1639 = vpow2.f32 %v1348_v32 }
0x1146   : > { %v1640_v33 = vpop.eup %1639 }
0x1147   : > { %v1069_v34 = vadd.f32 1.0, %v1640_v33 }
0x1149   : > { %1641 = vrcp.f32 %v1069_v34 }
0x1153   : > { %v1642_v35 = vpop.eup %1641 }
0x1154   : > { %v1083_v43 = vsub.f32 1.0, %v1642_v35  ;;  %v1089_v45 = vmul.f32 %v1642_v35, %v978_v24 }
0x11ac   : > { %v1074_v36 = vpop.permute.xlu0 %1073 }
0x11ad   : > { %v1076_v37 = vmul.f32 %v1642_v35, %v1074_v36 }
0x11af   : > { %1078 = vrot.lane.b32.xlu1 %v1076_v37, %s1737_s11 }
0x1221   : > { %v1079_v39 = vpop.permute.xlu1 %1078 }
0x1222   : > { %v1081_v40 = vadd.f32 %v1079_v39, %v1065_v31 }
0x1224   : > { %1643 = vtanh.f32 %v1081_v40 }
0x122e   : > { %v1644_v41 = vpop.eup %1643 }
0x122f   : > { %1085 = vrot.lane.b32.xlu0 %v1644_v41, %s1735_s9 }
0x1233   : > { %1101 = vperm.xlu0 %1601, %v1350_v42  }
0x12a1   : > { %v1086_v44 = vpop.permute.xlu0 %1085 }
0x12a2   : > { %v1088_v46 = vmul.f32 %v1086_v44, %v1083_v43 }
0x12a4   : > { %v1090_v47 = vadd.f32 %v1089_v45, %v1088_v46 }
0x12a6   : > { %1092 = vrot.lane.b32.xlu1 %v1090_v47, %s1737_s11 }
0x12b2   : > { %v1102_v49 = vpop.permute.xlu0 %1101 }
0x12b3   : > { %v1104_v50 = vmul.f32 %v1876_v11, %v1102_v49 }
0x1318   : > { %v1093_v48 = vpop.permute.xlu1 %1092 }
0x1319   : > { %1349 = vst.msk [vmem:[%s1890_s14 + $0x30] sm:$0xff] %vm278_vm1, %v1093_v48  ;;  %1487 = vmatmul.mubr.msk.f32.vlgmr.msra.gmra.mrb[6].mxu1 %vm278_vm1, %v1093_v48 }
0x13ec   : > { %v1173_v51 = vpop.f32.mrb[6].mxu1 }
0x13ed   : > { %v1174_v52 = vadd.f32 %v1173_v51, %v1104_v50  ;;  %v1488_v53 = vpop.f32.mrb[7].mxu1 }
0x13ef   : > { %v1177_v54 = vadd.f32 %v1905_v38, %v1174_v52 }
0x13f1   : > { %1185 = vrot.lane.b32.xlu1 %v1177_v54, %s1735_s9  ;;  %v1352_v55 = vmul.f32 -1.442695, %v1177_v54 }
0x13f3   : > { %1645 = vpow2.f32 %v1352_v55 }
0x13fd   : > { %v1646_v56 = vpop.eup %1645 }
0x13fe   : > { %v1181_v57 = vadd.f32 1.0, %v1646_v56 }
0x1400   : > { %1647 = vrcp.f32 %v1181_v57 }
0x140a   : > { %v1648_v58 = vpop.eup %1647 }
0x140b   : > { %v1195_v62 = vsub.f32 1.0, %v1648_v58  ;;  %v1201_v0 = vmul.f32 %v1648_v58, %v1090_v47 }
0x1463   : > { %v1186_v59 = vpop.permute.xlu1 %1185 }
0x1464   : > { %v1188_v60 = vmul.f32 %v1648_v58, %v1186_v59 }
0x1466   : > { %1190 = vrot.lane.b32.xlu0 %v1188_v60, %s1737_s11 }
0x14d8   : > { %v1191_v11 = vpop.permute.xlu0 %1190 }
0x14d9   : > { %v1193_v61 = vadd.f32 %v1191_v11, %v1177_v54 }
0x14db   : > { %1649 = vtanh.f32 %v1193_v61 }
0x14e5   : > { %v1650_v38 = vpop.eup %1649 }
0x14e6   : > { %1197 = vrot.lane.b32.xlu1 %v1650_v38, %s1735_s9  ;;  %s1655_s9 = sshll.u32 %s1738_s8, 4  ;;  %s1656_s9 = int_to_ptr.vmem [resolvable:$false] %s1655_s9 }
0x14e7   : > { %s1657_s10 = scalar_lea.vmem %s1656_s9, 2048  ;;  %p1658_p1 = scmp.lt.s32.totalorder %s2001_s24, %s1656_s9 }
0x14e8   : > { %p1659_p2 = scmp.lt.s32.totalorder %s1657_s10, %s1651_s21 }
0x14ea   : > { %p1660_p3 = por %p1659_p2, %p1658_p1 }
0x14ec   : > { %p1661_p5 = pnand %p1660_p3, %p1654_p0 }
0x1558   : > { %v1198_v63 = vpop.permute.xlu1 %1197 }
0x1559   : > { %v1200_v1 = vmul.f32 %v1198_v63, %v1195_v62 }
0x155b   : > { %v1202_v2 = vadd.f32 %v1201_v0, %v1200_v1 }
0x155d   : > { %1204 = vrot.lane.b32.xlu0 %v1202_v2, %s1737_s11 }
0x15cf   : > { %v1205_v5 = vpop.permute.xlu0 %1204 }
0x15d0   : > { %1353 = vst.msk [vmem:[%s1890_s14 + $0x38] sm:$0xff] %vm278_vm1, %v1205_v5  ;;  %1209 = vst.msk [vmem:[#allocation2] sm:$0xff] %vm278_vm1, %v1205_v5 }
0x15d1   : > { %1664 = shalt.err (!%p1661_p5)
}
0x15d2   : > { %s1665_s11 = scalar_lea.hbm %s1999_s29, 1024  ;;  %s1669_s14 = scalar_lea.hbm %s2059_s5, 2048 }
0x15d3   : > { %p1666_p6 = scmp.ne.s32.totalorder %s1999_s29, %s1665_s11  ;;  %p1670_p10 = scmp.lt.u32.totalorder %s1999_s29, %s2059_s5 }
0x15d4   : > { %p1671_p11 = scmp.lt.u32.totalorder %s1669_s14, %s1665_s11  ;;  %p1673_p13 = scmp.lt.u32.totalorder %s1665_s11, %s1999_s29 }
0x15d5   : > { %p1667_p7 = pnand %p1666_p6, %p1811_p4 }
0x15d6   : > { %p1672_p12 = por %p1671_p11, %p1670_p10 }
0x15d7   : > { %p1668_p9 = pneg %p1667_p7 }
0x15d8   : > { %p1674_p0 = por %p1673_p13, %p1672_p12 }
0x15da   : > { %p1675_p1 = pnand %p1674_p0, %p1668_p9 }
0x15dc   : > { %1678 = shalt.err (!%p1675_p1)
}
0x15dd   : > { %s1739_s17 = smov 128   ;;  %s1740_s25 = smov 8  }
0x15de   : > { %1537 = dma.vmem_to_hbm [thread:$0]  (%p1811_p4), %s2001_s24, 1024, %s1999_s29, %s2008_s7, %s1739_s17, %s1739_s17, %s1740_s25  }
0x15df PF: > { %p1543_p2 = scmp.ge.s32.totalorder %s1729_s23, 2  ;;  %s1242_s27 = sand.u32 1, %s1709_s18  }
0x15e0   : > { %s1243_s21 = scalar_lea.sflag [#allocation4], %s1242_s27 }
0x15e1   : > { %p1540_p3 = pnand %p1543_p2, %p1818_p8 }
0x15e3   : > { %1704 = dma.done.wait (!%p1540_p3), %s1243_s21, 1024  }
0x15e4   : > { %1706 = vsyncadd (!%p1540_p3), %s1243_s21, 4294966272  ;;  %s18_s23 = sadd.s32 1, %s1729_s23   ;;  %s2062_s18 = smov %s1713_s19 }
0x15e5   : > { %p15_p5 = scmp.ge.s32.totalorder %s18_s23, 4   ;;  %s2063_s19 = smov %s1717_s20 }
0x15e6   : > { %s2064_s20 = smov %s1824_s6  ;;  %s2065_s21 = smov %s1725_s22 }
0x15e7   : > { %s2066_s22 = smov %s2068_s26  ;;  %17 = sbr.rel (!%p15_p5) target bundleno = 4 (0x4), region = 93 }
0x15ee   :  { %1248 = vsyncpa [#allocation4], 1 }
0x15ef   :  { %1250 = vsyncpa [#allocation4 + $0x1], 1 }

</bundles_post_ra>
